<compile_context>
chip_gen: v6e
topology: v6e:2x2x1
jax: 0.10.0
libtpu: 0.0.40
codegen_flags: <defaults>
</compile_context>

<pallas_src>
import jax
import jax.numpy as jnp
from jax.experimental import pallas as pl
from jax.experimental.pallas import tpu as pltpu


def _gsn_kernel(x_ref, w1_ref, b1_ref, w2_ref, b2_ref, w3_ref, b3_ref, out_ref):
    # AvgPool2d(4) + Flatten + cat: the 4x4 window sits on the sublane axis of (TILE_B, 16, K+L);
    # 1/16 is folded into w1 and the representation occupies window-slot 0 of its columns, so one
    # sublane sum reproduces torch.cat([flatten(avgpool(fm)), rep], dim=1) up to the folded scale.
    x = jnp.sum(x_ref[...], axis=1)                                          # (TILE_B, K+L) f32

    # dense1 + ReLU (bf16 MXU inputs, f32 accumulate, f32 bias/ReLU epilogue).
    h = jnp.dot(x.astype(jnp.bfloat16), w1_ref[...],
                preferred_element_type=jnp.float32) + b1_ref[...]
    h = jnp.maximum(h, 0.0)

    # dense2 + ReLU.
    h = jnp.dot(h.astype(jnp.bfloat16), w2_ref[...],
                preferred_element_type=jnp.float32) + b2_ref[...]
    h = jnp.maximum(h, 0.0)

    # dense3 (out_features=1): VPU multiply + XLU lane reduce (MXU would waste a 1-column pass);
    # result stored lane-dense as a (TILE_B,) row instead of masked single-lane column stores.
    res = jnp.sum(h * w3_ref[...], axis=-1) + b3_ref[0]                      # (TILE_B,)
    out_ref[0, 0, :] = res.astype(out_ref.dtype)


def global_statistics_network(feature_map, representation, params, *, tile_b=None):
    """feature_map: (B, C, H, W) f32; representation: (B, latent_dim) f32 -> (B, 1) f32."""
    B, C, H, W = feature_map.shape
    Hp, Wp = H // 4, W // 4
    K = C * Hp * Wp
    L = representation.shape[1]
    KL = K + L

    w1, b1, w2, b2, w3, b3 = params
    hidden = w2.shape[1]

    if tile_b is None:
        # MXU LHS height: 128 rows on v5e (4x 128x128), 256 on v6e/v7x (2x 256x256). Halve if the
        # f32 input block would blow a conservative VMEM budget (input is double-buffered; keep
        # well under the scoped defaults: 16 MiB v5e, 32 MiB v6e/v7x, 64 MiB physical v7x).
        kind = jax.devices()[0].device_kind.lower()
        tile_b = 128 if "v5" in kind else 256
        while tile_b > 8 and tile_b * 16 * KL * 4 > (8 << 20):
            tile_b //= 2
    b_min = pl.cdiv(B, 8) * 8              # at least one sublane's worth of rows
    tile_b = min(tile_b, b_min)            # tiny batches: single grid step, no useless padding
    b_pad = pl.cdiv(b_min, tile_b) * tile_b
    num_tiles = b_pad // tile_b

    # Pure layout glue (no compute): (B, C, H, W) -> (B, 16, K+L). Window elements go to the
    # sublane axis, K ordered (c, h', w') matches Flatten, and the representation is appended as
    # L extra columns living only in window-slot 0 (zeros elsewhere) so the in-kernel sublane sum
    # yields the concatenated dense1 operand (AvgPool's 1/16 lives in w1).
    fm_win = feature_map.reshape(B, C, Hp, 4, Wp, 4)
    fm_win = fm_win.transpose(0, 3, 5, 1, 2, 4).reshape(B, 16, K)
    rep_win = jnp.concatenate(
        [representation[:, None, :],
         jnp.zeros((B, 15, L), representation.dtype)], axis=1)               # (B, 16, L)
    x_win = jnp.concatenate([fm_win, rep_win], axis=2)                       # (B, 16, K+L)
    if b_pad != B:
        x_win = jnp.pad(x_win, ((0, b_pad - B), (0, 0), (0, 0)))

    inputs = (x_win, w1, b1, w2, b2, w3, b3)

    def resident(arr):
        # Full-array block with a constant index_map: DMA'd once, stays VMEM-resident across tiles.
        return pl.BlockSpec(arr.shape, lambda *_: (0,) * arr.ndim)

    in_specs = [
        pl.BlockSpec((tile_b, 16, KL), lambda i: (i, 0, 0)),
        resident(w1), resident(b1), resident(w2), resident(b2), resident(w3),
        pl.BlockSpec(memory_space=pltpu.MemorySpace.SMEM),   # b3: scalar bias in SMEM
    ]
    out_spec = pl.BlockSpec((1, 1, tile_b), lambda i: (i, 0, 0))

    flops = int(2 * b_pad * (KL * hidden + hidden * hidden + hidden))
    bytes_accessed = int(sum(int(x.size) * x.dtype.itemsize for x in inputs) + b_pad * 4)

    # TODO(synk): if hidden is ever scaled up (>=2048), tile the hidden/N dim instead of keeping
    # w2 whole-array resident (v7x has only 64 MiB VMEM), and consider fp8 (v7x) / int8 (v6e) w2.
    out = pl.pallas_call(
        _gsn_kernel,
        grid=(num_tiles,),
        out_shape=jax.ShapeDtypeStruct((num_tiles, 1, tile_b), jnp.float32),
        in_specs=in_specs,
        out_specs=out_spec,
        compiler_params=pltpu.CompilerParams(
            # Batch tiles are independent -> shard across v7x's two TensorCores (no-op v5e/v6e).
            dimension_semantics=("parallel",),
            # Let XLA fuse the wrapper reshape/transpose/pad into the input DMA instead of
            # materializing a transposed copy of the feature map in HBM.
            allow_input_fusion=[True] + [False] * (len(inputs) - 1),
        ),
        cost_estimate=pl.CostEstimate(flops=flops, transcendentals=0,
                                      bytes_accessed=bytes_accessed),
    )(*inputs)
    return out.reshape(b_pad, 1)[:B]


def init_params(key, feature_map_size, feature_map_channels, latent_dim, hidden=512):
    """Deterministic init mirroring torch.nn.Linear default (U(-1/sqrt(fan_in), 1/sqrt(fan_in)))."""
    K = feature_map_size ** 2 * feature_map_channels
    d_in = K + latent_dim
    ks = jax.random.split(key, 6)

    def linear(kw, kb, fan_in, fan_out):
        bound = 1.0 / jnp.sqrt(jnp.float32(fan_in))
        w = jax.random.uniform(kw, (fan_out, fan_in), jnp.float32, -bound, bound)  # torch (out, in)
        b = jax.random.uniform(kb, (fan_out,), jnp.float32, -bound, bound)
        return w, b

    W1, B1 = linear(ks[0], ks[1], d_in, hidden)
    W2, B2 = linear(ks[2], ks[3], hidden, hidden)
    W3, B3 = linear(ks[4], ks[5], hidden, 1)

    # dense1 weight: feature-map rows pre-scaled by 1/16 (AvgPool folded in; exact, power of two)
    # and pre-concatenated with the representation rows in torch.cat column order.
    w1 = jnp.concatenate([W1[:, :K].T / 16.0, W1[:, K:].T], axis=0).astype(jnp.bfloat16)

    kernel_params = (
        w1,                                  # (K+L, hidden) bf16
        B1.reshape(1, hidden),               # f32
        W2.T.astype(jnp.bfloat16),           # (hidden, hidden) bf16
        B2.reshape(1, hidden),               # f32
        W3.reshape(1, hidden),               # (1, hidden) f32 row for the VPU/XLU dense3
        B3.reshape(1),                       # (1,) f32 scalar (SMEM)
    )
    torch_params = (W1, B1, W2, B2, W3, B3)
    return kernel_params, torch_params


def reference_f32(feature_map, representation, torch_params):
    """Pure-JAX reference with exact PyTorch (full-f32) semantics."""
    W1, B1, W2, B2, W3, B3 = torch_params
    B, C, H, W = feature_map.shape
    fm = feature_map.reshape(B, C, H // 4, 4, W // 4, 4).mean(axis=(3, 5))   # AvgPool2d(4)
    x = jnp.concatenate([fm.reshape(B, -1), representation], axis=1)         # Flatten + cat
    x = jnp.maximum(x @ W1.T + B1, 0.0)
    x = jnp.maximum(x @ W2.T + B2, 0.0)
    return x @ W3.T + B3


def reference_bf16(feature_map, representation, kernel_params):
    """Reference matching the kernel's math exactly (sum-pool + folded 1/16, bf16 MXU inputs)."""
    w1, b1, w2, b2, w3, b3 = kernel_params
    B, C, H, W = feature_map.shape
    fm = feature_map.reshape(B, C, H // 4, 4, W // 4, 4).sum(axis=(3, 5)).reshape(B, -1)
    x = jnp.concatenate([fm, representation], axis=1)
    h = jnp.dot(x.astype(jnp.bfloat16), w1, preferred_element_type=jnp.float32) + b1
    h = jnp.maximum(h, 0.0)
    h = jnp.dot(h.astype(jnp.bfloat16), w2, preferred_element_type=jnp.float32) + b2
    h = jnp.maximum(h, 0.0)
    return jnp.sum(h * w3, axis=-1, keepdims=True) + b3


if __name__ == "__main__":
    key = jax.random.PRNGKey(0)
    k_fm, k_rep, k_p = jax.random.split(key, 3)

    # Small, self-consistent shapes: input spatial 16 -> pooled 4 (= feature_map_size in __init__,
    # which dense1's in_features requires for the module to be shape-correct).
    B, C, H, W = 2, 4, 16, 16
    latent_dim = 8
    feature_map_size = H // 4  # = 4

    feature_map = jax.random.normal(k_fm, (B, C, H, W), jnp.float32)
    representation = jax.random.normal(k_rep, (B, latent_dim), jnp.float32)

    params, torch_params = init_params(k_p, feature_map_size, C, latent_dim)

    out = global_statistics_network(feature_map, representation, params)
    out = jax.block_until_ready(out)
    assert out.shape == (B, 1), out.shape

    # Tight check against a reference that matches the kernel's bf16 weight quantization exactly.
    ref_q = reference_bf16(feature_map, representation, params)
    assert jnp.allclose(out, ref_q, atol=5e-3, rtol=5e-3), (out, ref_q)

    # Loose check against exact PyTorch f32 semantics (bf16 weight quantization is the only delta).
    ref = reference_f32(feature_map, representation, torch_params)
    assert jnp.allclose(out, ref, atol=5e-2, rtol=5e-2), (out, ref)

    print("KERNEL_OK")
</pallas_src>

<mosaic_0001>
module attributes {stable_mosaic.version = 11 : i64} {
  func.func @_gsn_kernel(%arg0: i32, %arg1: memref<8x16x72xf32, #tpu.memory_space<vmem>>, %arg2: memref<72x512xbf16, #tpu.memory_space<vmem>>, %arg3: memref<1x512xf32, #tpu.memory_space<vmem>>, %arg4: memref<512x512xbf16, #tpu.memory_space<vmem>>, %arg5: memref<1x512xf32, #tpu.memory_space<vmem>>, %arg6: memref<1x512xf32, #tpu.memory_space<vmem>>, %arg7: memref<1xf32, #tpu.memory_space<smem>>, %arg8: memref<1x1x8xf32, #tpu.memory_space<vmem>>) attributes {dimension_semantics = [#tpu.dimension_semantics<parallel>], iteration_bounds = array<i64: 1>, scalar_prefetch = 0 : i64, scratch_operands = 0 : i64, tpu.core_type = #tpu.core_type<tc>, window_params = [{transform_indices = @transform_0, window_bounds = array<i64: 8, 16, 72>}, {pipeline_mode = #tpu.pipeline_mode<synchronous>, transform_indices = @transform_1, window_bounds = array<i64: 72, 512>}, {pipeline_mode = #tpu.pipeline_mode<synchronous>, transform_indices = @transform_2, window_bounds = array<i64: 1, 512>}, {pipeline_mode = #tpu.pipeline_mode<synchronous>, transform_indices = @transform_3, window_bounds = array<i64: 512, 512>}, {pipeline_mode = #tpu.pipeline_mode<synchronous>, transform_indices = @transform_4, window_bounds = array<i64: 1, 512>}, {pipeline_mode = #tpu.pipeline_mode<synchronous>, transform_indices = @transform_5, window_bounds = array<i64: 1, 512>}, {transform_indices = @transform_6, window_bounds = array<i64: 1>}, {transform_indices = @transform_7, window_bounds = array<i64: 1, 1, 8>}]} {
    %c0 = arith.constant 0 : index
    %c0_0 = arith.constant 0 : index
    %c0_1 = arith.constant 0 : index
    %0 = vector.load %arg1[%c0, %c0_0, %c0_1] : memref<8x16x72xf32, #tpu.memory_space<vmem>>, vector<8x16x72xf32>
    %cst = arith.constant dense<0.000000e+00> : vector<8x72xf32>
    %1 = vector.multi_reduction <add>, %0, %cst [1] : vector<8x16x72xf32> to vector<8x72xf32>
    %2 = arith.truncf %1 : vector<8x72xf32> to vector<8x72xbf16>
    %c0_2 = arith.constant 0 : index
    %c0_3 = arith.constant 0 : index
    %3 = vector.load %arg2[%c0_2, %c0_3] : memref<72x512xbf16, #tpu.memory_space<vmem>>, vector<72x512xbf16>
    %cst_4 = arith.constant dense<0.000000e+00> : vector<8x512xf32>
    %4 = tpu.matmul %2, %3, %cst_4 {dimension_numbers = #tpu.dot_dimension_numbers<[1], [0], [0], [1], [0, 0, 1, 1], [], []>} : vector<8x72xbf16>, vector<72x512xbf16>, vector<8x512xf32> -> vector<8x512xf32>
    %c0_5 = arith.constant 0 : index
    %c0_6 = arith.constant 0 : index
    %5 = vector.load %arg3[%c0_5, %c0_6] : memref<1x512xf32, #tpu.memory_space<vmem>>, vector<1x512xf32>
    %6 = vector.broadcast %5 : vector<1x512xf32> to vector<8x512xf32>
    %7 = arith.addf %4, %6 : vector<8x512xf32>
    %cst_7 = arith.constant 0.000000e+00 : f32
    %8 = vector.broadcast %cst_7 : f32 to vector<8x512xf32>
    %9 = arith.maximumf %7, %8 : vector<8x512xf32>
    %10 = arith.truncf %9 : vector<8x512xf32> to vector<8x512xbf16>
    %c0_8 = arith.constant 0 : index
    %c0_9 = arith.constant 0 : index
    %11 = vector.load %arg4[%c0_8, %c0_9] : memref<512x512xbf16, #tpu.memory_space<vmem>>, vector<512x512xbf16>
    %cst_10 = arith.constant dense<0.000000e+00> : vector<8x512xf32>
    %12 = tpu.matmul %10, %11, %cst_10 {dimension_numbers = #tpu.dot_dimension_numbers<[1], [0], [0], [1], [0, 0, 1, 1], [], []>} : vector<8x512xbf16>, vector<512x512xbf16>, vector<8x512xf32> -> vector<8x512xf32>
    %c0_11 = arith.constant 0 : index
    %c0_12 = arith.constant 0 : index
    %13 = vector.load %arg5[%c0_11, %c0_12] : memref<1x512xf32, #tpu.memory_space<vmem>>, vector<1x512xf32>
    %14 = vector.broadcast %13 : vector<1x512xf32> to vector<8x512xf32>
    %15 = arith.addf %12, %14 : vector<8x512xf32>
    %cst_13 = arith.constant 0.000000e+00 : f32
    %16 = vector.broadcast %cst_13 : f32 to vector<8x512xf32>
    %17 = arith.maximumf %15, %16 : vector<8x512xf32>
    %c0_14 = arith.constant 0 : index
    %c0_15 = arith.constant 0 : index
    %18 = vector.load %arg6[%c0_14, %c0_15] : memref<1x512xf32, #tpu.memory_space<vmem>>, vector<1x512xf32>
    %19 = vector.broadcast %18 : vector<1x512xf32> to vector<8x512xf32>
    %20 = arith.mulf %17, %19 : vector<8x512xf32>
    %cst_16 = arith.constant dense<0.000000e+00> : vector<8xf32>
    %21 = vector.multi_reduction <add>, %20, %cst_16 [1] : vector<8x512xf32> to vector<8xf32>
    %c0_17 = arith.constant 0 : index
    %22 = memref.load %arg7[%c0_17] : memref<1xf32, #tpu.memory_space<smem>>
    %23 = vector.broadcast %22 : f32 to vector<8xf32>
    %24 = arith.addf %21, %23 : vector<8xf32>
    %c0_18 = arith.constant 0 : index
    %c0_19 = arith.constant 0 : index
    %c0_20 = arith.constant 0 : index
    %25 = vector.load %arg8[%c0_18, %c0_19, %c0_20] : memref<1x1x8xf32, #tpu.memory_space<vmem>>, vector<1x1x8xf32>
    %26 = vector.shape_cast %25 : vector<1x1x8xf32> to vector<8xf32>
    %27 = vector.shape_cast %24 : vector<8xf32> to vector<1x1x8xf32>
    tpu.vector_store %arg8[%c0_18, %c0_19, %c0_20], %27 {strides = array<i32>} : memref<1x1x8xf32, #tpu.memory_space<vmem>>, vector<1x1x8xf32>,
    return
  }
  func.func @transform_0(%arg0: i32) -> (i32, i32, i32) {
    %c0_i32 = arith.constant 0 : i32
    %c0_i32_0 = arith.constant 0 : i32
    %c0_i32_1 = arith.constant 0 : i32
    return %arg0, %c0_i32, %c0_i32_0 : i32, i32, i32
  }
  func.func @transform_1(%arg0: i32) -> (i32, i32) {
    %c0_i32 = arith.constant 0 : i32
    %c0_i32_0 = arith.constant 0 : i32
    %c0_i32_1 = arith.constant 0 : i32
    return %c0_i32, %c0_i32_0 : i32, i32
  }
  func.func @transform_2(%arg0: i32) -> (i32, i32) {
    %c0_i32 = arith.constant 0 : i32
    %c0_i32_0 = arith.constant 0 : i32
    %c0_i32_1 = arith.constant 0 : i32
    return %c0_i32, %c0_i32_0 : i32, i32
  }
  func.func @transform_3(%arg0: i32) -> (i32, i32) {
    %c0_i32 = arith.constant 0 : i32
    %c0_i32_0 = arith.constant 0 : i32
    %c0_i32_1 = arith.constant 0 : i32
    return %c0_i32, %c0_i32_0 : i32, i32
  }
  func.func @transform_4(%arg0: i32) -> (i32, i32) {
    %c0_i32 = arith.constant 0 : i32
    %c0_i32_0 = arith.constant 0 : i32
    %c0_i32_1 = arith.constant 0 : i32
    return %c0_i32, %c0_i32_0 : i32, i32
  }
  func.func @transform_5(%arg0: i32) -> (i32, i32) {
    %c0_i32 = arith.constant 0 : i32
    %c0_i32_0 = arith.constant 0 : i32
    %c0_i32_1 = arith.constant 0 : i32
    return %c0_i32, %c0_i32_0 : i32, i32
  }
  func.func @transform_6(%arg0: i32) -> i32 {
    %c0_i32 = arith.constant 0 : i32
    %c0_i32_0 = arith.constant 0 : i32
    return %c0_i32 : i32
  }
  func.func @transform_7(%arg0: i32) -> (i32, i32, i32) {
    %c0_i32 = arith.constant 0 : i32
    %c0_i32_0 = arith.constant 0 : i32
    %c0_i32_1 = arith.constant 0 : i32
    return %arg0, %c0_i32, %c0_i32_0 : i32, i32, i32
  }
}

</mosaic_0001>

<bundles_post_ra>
// kernel: tpu_custom_call.1
= control target key start
LH: loop header
LB: loop body
LE: loop exit
PB: predicated region body
PF: predicated region fallthrough
CT: control target
= control target key end

     0   :  { %13 = vsyncpa [#allocation4], 0  ;;  %s2093_s0 = inlined_call_operand.hbm [shape: f32[8,16,72], index: 0, kind: input, shape index: {}]   ;;  %s2094_s1 = inlined_call_operand.hbm [shape: bf16[72,512], index: 1, kind: input, shape index: {}]   ;;  %s2095_s2 = inlined_call_operand.vmem [shape: f32[1,512], index: 2, kind: input, shape index: {}]   ;;  %s2096_s3 = inlined_call_operand.hbm [shape: bf16[512,512], index: 3, kind: input, shape index: {}]   ;;  %s2097_s4 = inlined_call_operand.vmem [shape: f32[1,512], index: 4, kind: input, shape index: {}]   ;;  %s2098_s5 = inlined_call_operand.hbm [shape: f32[1,512], index: 5, kind: input, shape index: {}]   ;;  %s2099_s6 = inlined_call_operand.<no memory space> [shape: f32[1], index: 6, kind: input, shape index: {}]   ;;  %s2100_s7 = inlined_call_operand.hbm [shape: f32[1,1,8], index: 7, kind: output, shape index: {}]  }
   0x1   :  { %14 = vsyncpa [#allocation7], 0 }
   0x2   :  { %15 = vsyncpa [#allocation10], 0 }
   0x3   :  { %16 = vsyncpa [#allocation5], 0  ;;  %s1955_s24 = smov [#allocation6]  }
   0x4   :  { %s34_s25 = sshll.u32 %s1955_s24, 4  ;;  %s35_s25 = int_to_ptr.vmem [resolvable:$true] %s34_s25 }
   0x5   :  { %s1855_s26 = scalar_lea.vmem %s35_s25, 2304  ;;  %p1860_p1 = scmp.lt.s32.totalorder %s35_s25, %s35_s25 }
   0x6   :  { %p1856_p0 = scmp.ne.s32.totalorder %s35_s25, %s1855_s26  ;;  %p1861_p2 = scmp.lt.s32.totalorder %s1855_s26, %s1855_s26 }
   0x8   :  { %p1862_p3 = por %p1861_p2, %p1860_p1 }
   0xa   :  { %p1863_p4 = pnand %p1862_p3, %p1856_p0 }
   0xc   :  { %1866 = shalt.err (!%p1863_p4)
}
   0xd   :  { %s1956_s27 = smov 256   ;;  %s1957_s28 = smov 16  }
   0xe   :  { %40 = dma.hbm_to_vmem [thread:$0]  %s2094_s1, 2304, %s35_s25, [#allocation7], %s1956_s27, %s1956_s27, %s1957_s28  }
   0xf   :  { %s1958_s8 = smov [#allocation3]  }
  0x10   :  { %s22_s9 = sshll.u32 %s1958_s8, 4  ;;  %s23_s9 = int_to_ptr.vmem [resolvable:$true] %s22_s9 }
  0x11   :  { %s1875_s10 = scalar_lea.vmem %s23_s9, 2048  ;;  %p1880_p6 = scmp.lt.s32.totalorder %s23_s9, %s23_s9 }
  0x12   :  { %p1876_p5 = scmp.ne.s32.totalorder %s23_s9, %s1875_s10  ;;  %p1881_p7 = scmp.lt.s32.totalorder %s1875_s10, %s1875_s10 }
  0x14   :  { %p1882_p8 = por %p1881_p7, %p1880_p6 }
  0x16   :  { %p1883_p9 = pnand %p1882_p8, %p1876_p5 }
  0x18   :  { %1886 = shalt.err (!%p1883_p9)
}
  0x19   :  { %s1959_s11 = smov 128   ;;  %s1960_s12 = smov 8  }
  0x1a   :  { %28 = dma.hbm_to_vmem [thread:$0]  %s2093_s0, 2048, %s23_s9, [#allocation4], %s1959_s11, %s1959_s11, %s1960_s12  }
  0x1b   :  { %s1961_s15 = smov [#allocation8]   ;;  %s1962_s17 = smov [#allocation9]  }
  0x1c   :  { %s48_s16 = sshll.u32 %s1961_s15, 4  ;;  %s63_s1 = sshll.u32 %s1962_s17, 4  ;;  %s49_s16 = int_to_ptr.vmem [resolvable:$true] %s48_s16  ;;  %s64_s1 = int_to_ptr.vmem [resolvable:$true] %s63_s1 }
  0x1d   :  { %s1895_s18 = scalar_lea.vmem %s49_s16, 16384  ;;  %p1900_p11 = scmp.lt.s32.totalorder %s49_s16, %s49_s16 }
  0x1e   :  { %p1896_p10 = scmp.ne.s32.totalorder %s49_s16, %s1895_s18  ;;  %p1901_p12 = scmp.lt.s32.totalorder %s1895_s18, %s1895_s18 }
  0x20   :  { %p1902_p13 = por %p1901_p12, %p1900_p11 }
  0x22   :  { %p1903_p0 = pnand %p1902_p13, %p1896_p10 }
  0x24   :  { %1906 = shalt.err (!%p1903_p0)
}
  0x25   :  { %54 = dma.hbm_to_vmem [thread:$0]  %s2096_s3, 16384, %s49_s16, [#allocation7], %s1956_s27, %s1956_s27, %s1957_s28  }
  0x26   :  { %s1915_s0 = scalar_lea.vmem %s64_s1, 64  ;;  %p1920_p2 = scmp.lt.s32.totalorder %s64_s1, %s64_s1 }
  0x27   :  { %p1916_p1 = scmp.ne.s32.totalorder %s64_s1, %s1915_s0  ;;  %p1921_p3 = scmp.lt.s32.totalorder %s1915_s0, %s1915_s0 }
  0x29   :  { %p1922_p4 = por %p1921_p3, %p1920_p2 }
  0x2b   :  { %p1923_p5 = pnand %p1922_p4, %p1916_p1 }
  0x2d   :  { %1926 = shalt.err (!%p1923_p5)
}
  0x2e   :  { %66 = dma.hbm_to_vmem [thread:$0]  %s2098_s5, 64, %s64_s1, [#allocation10]  }
  0x2f   :  { %1947 = dma.done.wait [#allocation4], 2048  }
  0x30   :  { %1948 = vsyncadd [#allocation4], 4294965248 }
  0x31   :  { %1949 = dma.done.wait [#allocation7], 18688  }
  0x32   :  { %1950 = vsyncadd [#allocation7], 4294948608 }
  0x33   :  { %1951 = dma.done.wait [#allocation10], 64  }
  0x34   :  { %1952 = vsyncadd [#allocation10], 4294967232  ;;  %v1963_v0 = vmov 0   ;;  %v195_v1 = vld [vmem:[#allocation6 + $0x80] sm:$0xff]  ;;  %vm343_vm0 = vcmask 1043456   ;;  %v196_v2 = vld [vmem:[#allocation6 + $0x88] sm:$0xff] }
  0x35   :  { %388 = vmatprep.mubr.bf16.mxu0 %v1963_v0  ;;  %429 = vmatprep.mubr.bf16.mxu1 %v1963_v0  ;;  %v1482_v3 = vcombine.high %v195_v1, %v195_v1  ;;  %v1484_v4 = vcombine.high %v196_v2, %v196_v2  ;;  %v1481_v5 = vcombine.low %v195_v1, %v195_v1  ;;  %v1631_v7 = vld [vmem:[#allocation6 + $0x64] ss:$16 sps:$4 sm:$0xff]   ;;  %v1633_v8 = vld [vmem:[#allocation6 + $0x6c] ss:$16 sps:$4 sm:$0xff]   ;;  %v1635_v11 = vld [vmem:[#allocation6 + $0x60] ss:$16 sps:$4 sm:$0xff]  }
  0x36   :  { %v1483_v6 = vcombine.low %v196_v2, %v196_v2  ;;  %v1636_v12 = vld [vmem:[#allocation6 + $0x68] ss:$16 sps:$4 sm:$0xff]   ;;  %v1637_v13 = vld [vmem:[#allocation6 + $0x44] ss:$16 sps:$4 sm:$0xff]   ;;  %v1639_v14 = vld [vmem:[#allocation6 + $0x4c] ss:$16 sps:$4 sm:$0xff]  }
  0x37   :  { %1485 = vmatprep.subr.msk.bf16.mxu0 %vm343_vm0, %v1482_v3  ;;  %1487 = vmatprep.subr.msk.bf16.mxu1 %vm343_vm0, %v1484_v4  ;;  %v345_v9 = vsel %vm343_vm0, %v1481_v5, 0  ;;  %v1641_v15 = vld [vmem:[#allocation6 + $0x40] ss:$16 sps:$4 sm:$0xff]   ;;  %v1642_v16 = vld [vmem:[#allocation6 + $0x48] ss:$16 sps:$4 sm:$0xff]   ;;  %vm98_vm1 = vcmask 588800  }
  0x38   :  { %v351_v10 = vsel %vm343_vm0, %v1483_v6, 0  ;;  %363 = vmatpush1.bf16.msra.mxu0 %v345_v9  ;;  %v1643_v17 = vld [vmem:[#allocation6 + $0x24] ss:$16 sps:$4 sm:$0xff]   ;;  %v1645_v18 = vld [vmem:[#allocation6 + $0x2c] ss:$16 sps:$4 sm:$0xff]   ;;  %vm235_vm2 = vcmask 1041409  }
  0x39   :  { %404 = vmatpush1.bf16.msra.mxu1 %v351_v10  ;;  %364 = vmatprep.subr.bf16.mxu0 %v1631_v7  ;;  %v1647_v19 = vld [vmem:[#allocation6 + $0x20] ss:$16 sps:$4 sm:$0xff]   ;;  %v1648_v20 = vld [vmem:[#allocation6 + $0x28] ss:$16 sps:$4 sm:$0xff]   ;;  %v1649_v21 = vld [vmem:[#allocation6 + $0x4] ss:$16 sps:$4 sm:$0xff]  }
  0x3a   :  { %405 = vmatprep.subr.bf16.mxu1 %v1633_v8  ;;  %v1651_v22 = vld [vmem:[#allocation6 + $0xc] ss:$16 sps:$4 sm:$0xff]   ;;  %v82_v23 = vld [vmem:[#allocation3] sm:$0xff]  ;;  %v84_v25 = vld [vmem:[#allocation3 + $0x10] sm:$0xff]  ;;  %vm237_vm3 = vcmask 1042434   ;;  %vm239_vm4 = vcmask 1043459  }
  0x3b   :  { %v83_v24 = vld [vmem:[#allocation3 + $0x8] sm:$0xff]  ;;  %v85_v26 = vld [vmem:[#allocation3 + $0x18] sm:$0xff]  ;;  %v86_v27 = vld [vmem:[#allocation3 + $0x20] sm:$0xff]  ;;  %v99_v28 = vsel %vm98_vm1, %v82_v23, 0.0  ;;  %v108_v34 = vsel %vm98_vm1, %v84_v25, 0.0  ;;  %vm241_vm5 = vcmask 1044484  }
  0x3c   :  { %365 = vmatpush1.bf16.msra.mxu0 %v1635_v11  ;;  %v100_v29 = vsel %vm98_vm1, %v83_v24, 0.0  ;;  %v87_v30 = vld [vmem:[#allocation3 + $0x28] sm:$0xff]  ;;  %v88_v31 = vld [vmem:[#allocation3 + $0x30] sm:$0xff]  ;;  %v89_v32 = vld [vmem:[#allocation3 + $0x38] sm:$0xff]  ;;  %v109_v35 = vsel %vm98_vm1, %v85_v26, 0.0  ;;  %v117_v36 = vsel %vm98_vm1, %v86_v27, 0.0 }
  0x3d   :  { %406 = vmatpush1.bf16.msra.mxu1 %v1636_v12  ;;  %366 = vmatprep.subr.bf16.mxu0 %v1637_v13  ;;  %v101_v33 = vadd.f32 %v100_v29, %v99_v28  ;;  %v1653_v37 = vld [vmem:[#allocation6] ss:$16 sps:$4 sm:$0xff]   ;;  %v91_v39 = vld [vmem:[#allocation3 + $0x48] sm:$0xff]  ;;  %v110_v41 = vadd.f32 %v109_v35, %v108_v34  ;;  %v118_v42 = vsel %vm98_vm1, %v87_v30, 0.0  ;;  %v126_v43 = vsel %vm98_vm1, %v88_v31, 0.0  ;;  %v93_v45 = vld [vmem:[#allocation3 + $0x58] sm:$0xff] }
  0x3e   :  { %407 = vmatprep.subr.bf16.mxu1 %v1639_v14  ;;  %v90_v38 = vld [vmem:[#allocation3 + $0x40] sm:$0xff]  ;;  %v92_v40 = vld [vmem:[#allocation3 + $0x50] sm:$0xff]  ;;  %v127_v44 = vsel %vm98_vm1, %v89_v32, 0.0  ;;  %v95_v47 = vld [vmem:[#allocation3 + $0x68] sm:$0xff]  ;;  %v119_v49 = vadd.f32 %v118_v42, %v117_v36  ;;  %v136_v54 = vsel %vm98_vm1, %v91_v39, 0.0  ;;  %v145_v56 = vsel %vm98_vm1, %v93_v45, 0.0 }
  0x3f   :  { %v94_v46 = vld [vmem:[#allocation3 + $0x60] sm:$0xff]  ;;  %v102_v48 = vrot.slane %v101_v33, 4  ;;  %v128_v50 = vadd.f32 %v127_v44, %v126_v43  ;;  %v135_v51 = vsel %vm98_vm1, %v90_v38, 0.0  ;;  %v1654_v52 = vld [vmem:[#allocation6 + $0x8] ss:$16 sps:$4 sm:$0xff]   ;;  %v111_v53 = vrot.slane %v110_v41, 4 }
  0x40   :  { %367 = vmatpush1.bf16.msra.mxu0 %v1641_v15  ;;  %v144_v55 = vsel %vm98_vm1, %v92_v40, 0.0  ;;  %v96_v57 = vld [vmem:[#allocation3 + $0x70] sm:$0xff]  ;;  %v120_v59 = vrot.slane %v119_v49, 4  ;;  %v137_v61 = vadd.f32 %v136_v54, %v135_v51  ;;  %v153_v0 = vsel %vm98_vm1, %v94_v46, 0.0  ;;  %v97_v3 = vld [vmem:[#allocation3 + $0x78] sm:$0xff]  ;;  %s1964_s25 = smov [#allocation11]  }
  0x41   :  { %408 = vmatpush1.bf16.msra.mxu1 %v1642_v16  ;;  %368 = vmatprep.subr.bf16.mxu0 %v1643_v17  ;;  %v103_v58 = vadd.f32 %v102_v48, %v101_v33  ;;  %v129_v60 = vrot.slane %v128_v50, 4  ;;  %v112_v62 = vadd.f32 %v111_v53, %v110_v41  ;;  %v146_v63 = vadd.f32 %v145_v56, %v144_v55  ;;  %v1657_v2 = vld [vmem:[#allocation8 + $0xe4] ss:$16 sps:$4 sm:$0xff]   ;;  %s1454_s26 = sshll.u32 %s1964_s25, 4  ;;  %s1455_s26 = int_to_ptr.vmem [resolvable:$true] %s1454_s26 }
  0x42   :  { %409 = vmatprep.subr.bf16.mxu1 %v1645_v18  ;;  %v154_v1 = vsel %vm98_vm1, %v95_v47, 0.0  ;;  %v121_v5 = vadd.f32 %v120_v59, %v119_v49  ;;  %v138_v7 = vrot.slane %v137_v61, 4  ;;  %v1660_v8 = vld [vmem:[#allocation8 + $0x2e4] ss:$16 sps:$4 sm:$0xff]   ;;  %v162_v12 = vsel %vm98_vm1, %v96_v57, 0.0  ;;  %s1927_s27 = scalar_lea.vmem %s1455_s26, 16  ;;  %p1932_p7 = scmp.lt.s32.totalorder %s1455_s26, %s1455_s26 }
  0x43   :  { %v104_v4 = vrot.slane %v103_v58, 2  ;;  %v130_v6 = vadd.f32 %v129_v60, %v128_v50  ;;  %v113_v9 = vrot.slane %v112_v62, 2  ;;  %v147_v10 = vrot.slane %v146_v63, 4  ;;  %p1928_p6 = scmp.ne.s32.totalorder %s1455_s26, %s1927_s27  ;;  %s1931_s28 = scalar_lea.vmem %s1455_s26, 32 }
  0x44   :  { %369 = vmatpush1.bf16.msra.mxu0 %v1647_v19  ;;  %v155_v11 = vadd.f32 %v154_v1, %v153_v0  ;;  %v122_v14 = vrot.slane %v121_v5, 2  ;;  %v139_v16 = vadd.f32 %v138_v7, %v137_v61  ;;  %vm243_vm6 = vcmask 1045509   ;;  %p1933_p8 = scmp.lt.s32.totalorder %s1931_s28, %s1927_s27 }
  0x45   :  { %410 = vmatpush1.bf16.msra.mxu1 %v1648_v20  ;;  %370 = vmatprep.subr.bf16.mxu0 %v1649_v21  ;;  %v105_v13 = vadd.f32 %v104_v4, %v103_v58  ;;  %v131_v15 = vrot.slane %v130_v6, 2  ;;  %v114_v17 = vadd.f32 %v113_v9, %v112_v62  ;;  %v148_v18 = vadd.f32 %v147_v10, %v146_v63  ;;  %v1655_v9 = vld [vmem:[#allocation8 + $0xe0] ss:$16 sps:$4 sm:$0xff]  }
  0x46   :  { %411 = vmatprep.subr.bf16.mxu1 %v1651_v22  ;;  %v156_v19 = vrot.slane %v155_v11, 4  ;;  %v163_v20 = vsel %vm98_vm1, %v97_v3, 0.0  ;;  %v123_v22 = vadd.f32 %v122_v14, %v121_v5  ;;  %v140_v24 = vrot.slane %v139_v16, 2  ;;  %v1658_v10 = vld [vmem:[#allocation8 + $0x2e0] ss:$16 sps:$4 sm:$0xff]   ;;  %p1934_p9 = por %p1933_p8, %p1932_p7 }
  0x47   :  { %v106_v21 = vrot.slane %v105_v13, 1  ;;  %v132_v23 = vadd.f32 %v131_v15, %v130_v6  ;;  %v115_v25 = vrot.slane %v114_v17, 1  ;;  %v149_v26 = vrot.slane %v148_v18, 2  ;;  %v1666_v14 = vld [vmem:[#allocation8 + $0x2c4] ss:$16 sps:$4 sm:$0xff]  }
  0x48   :  { %371 = vmatpush1.bf16.msra.mxu0 %v1653_v37  ;;  %v157_v27 = vadd.f32 %v156_v19, %v155_v11  ;;  %v164_v28 = vadd.f32 %v163_v20, %v162_v12  ;;  %v124_v30 = vrot.slane %v123_v22, 1  ;;  %v141_v32 = vadd.f32 %v140_v24, %v139_v16  ;;  %v1663_v12 = vld [vmem:[#allocation8 + $0xc4] ss:$16 sps:$4 sm:$0xff]   ;;  %v1661_v15 = vld [vmem:[#allocation8 + $0xc0] ss:$16 sps:$4 sm:$0xff]   ;;  %p1935_p10 = pnand %p1934_p9, %p1928_p6 }
  0x49   :  { %412 = vmatpush1.bf16.msra.mxu1 %v1654_v52  ;;  %1236 = vmatprep.subr.bf16.mxu0 %v1657_v2  ;;  %v107_v29 = vadd.f32 %v106_v21, %v105_v13  ;;  %v133_v31 = vrot.slane %v132_v23, 1  ;;  %v116_v33 = vadd.f32 %v115_v25, %v114_v17  ;;  %v150_v34 = vadd.f32 %v149_v26, %v148_v18  ;;  %v1664_v16 = vld [vmem:[#allocation8 + $0x2c0] ss:$16 sps:$4 sm:$0xff]   ;;  %v1669_v17 = vld [vmem:[#allocation8 + $0xa4] ss:$16 sps:$4 sm:$0xff]  }
  0x4a   :  { %1277 = vmatprep.subr.bf16.mxu1 %v1660_v8  ;;  %v158_v35 = vrot.slane %v157_v27, 2  ;;  %v165_v36 = vrot.slane %v164_v28, 4  ;;  %v125_v37 = vadd.f32 %v124_v30, %v123_v22  ;;  %v142_v39 = vrot.slane %v141_v32, 1  ;;  %v1672_v18 = vld [vmem:[#allocation8 + $0x2a4] ss:$16 sps:$4 sm:$0xff]  }
  0x4b   :  { %v134_v38 = vadd.f32 %v133_v31, %v132_v23  ;;  %v171_v40 = vpack.c.bf16 %v107_v29, %v107_v29  ;;  %v151_v41 = vrot.slane %v150_v34, 1  ;;  %v172_v44 = vpack.c.bf16 %v116_v33, %v116_v33  ;;  %v1667_v19 = vld [vmem:[#allocation8 + $0xa0] ss:$16 sps:$4 sm:$0xff]   ;;  %v1675_v21 = vld [vmem:[#allocation8 + $0x84] ss:$16 sps:$4 sm:$0xff]  }
  0x4c   :  { %v159_v42 = vadd.f32 %v158_v35, %v157_v27  ;;  %v166_v43 = vadd.f32 %v165_v36, %v164_v28  ;;  %v143_v45 = vadd.f32 %v142_v39, %v141_v32  ;;  %v173_v46 = vpack.c.bf16 %v125_v37, %v125_v37  ;;  %v1670_v20 = vld [vmem:[#allocation8 + $0x2a0] ss:$16 sps:$4 sm:$0xff]   ;;  %v1678_v22 = vld [vmem:[#allocation8 + $0x284] ss:$16 sps:$4 sm:$0xff]  }
  0x4d   :  { %v174_v47 = vpack.c.bf16 %v134_v38, %v134_v38  ;;  %v227_v48 = vunpack.c.l.b16 %v171_v40  ;;  %v152_v49 = vadd.f32 %v151_v41, %v150_v34  ;;  %v228_v52 = vunpack.c.l.b16 %v172_v44  ;;  %v1673_v23 = vld [vmem:[#allocation8 + $0x80] ss:$16 sps:$4 sm:$0xff]   ;;  %v1681_v25 = vld [vmem:[#allocation8 + $0x64] ss:$16 sps:$4 sm:$0xff]  }
  0x4e   :  { %v160_v50 = vrot.slane %v159_v42, 1  ;;  %v167_v51 = vrot.slane %v166_v43, 2  ;;  %v175_v53 = vpack.c.bf16 %v143_v45, %v143_v45  ;;  %v229_v54 = vunpack.c.l.b16 %v173_v46  ;;  %v1676_v24 = vld [vmem:[#allocation8 + $0x280] ss:$16 sps:$4 sm:$0xff]   ;;  %v1684_v26 = vld [vmem:[#allocation8 + $0x264] ss:$16 sps:$4 sm:$0xff]  }
  0x4f   :  { %v230_v55 = vunpack.c.l.b16 %v174_v47  ;;  %v176_v58 = vpack.c.bf16 %v152_v49, %v152_v49  ;;  %v236_v59 = vsel %vm235_vm2, %v228_v52, %v227_v48  ;;  %vm245_vm7 = vcmask 1046534   ;;  %v1679_v27 = vld [vmem:[#allocation8 + $0x60] ss:$16 sps:$4 sm:$0xff]   ;;  %v1687_v29 = vld [vmem:[#allocation8 + $0x44] ss:$16 sps:$4 sm:$0xff]  }
  0x50   :  { %v161_v56 = vadd.f32 %v160_v50, %v159_v42  ;;  %v168_v57 = vadd.f32 %v167_v51, %v166_v43  ;;  %v231_v60 = vunpack.c.l.b16 %v175_v53  ;;  %v238_v61 = vsel %vm237_vm3, %v229_v54, %v236_v59  ;;  %v1682_v28 = vld [vmem:[#allocation8 + $0x260] ss:$16 sps:$4 sm:$0xff]   ;;  %v1690_v30 = vld [vmem:[#allocation8 + $0x244] ss:$16 sps:$4 sm:$0xff]  }
  0x51   :  { %v232_v0 = vunpack.c.l.b16 %v176_v58  ;;  %v240_v1 = vsel %vm239_vm4, %v230_v55, %v238_v61  ;;  %vm247_vm8 = vcmask 1047559   ;;  %v1685_v31 = vld [vmem:[#allocation8 + $0x40] ss:$16 sps:$4 sm:$0xff]   ;;  %v1693_v33 = vld [vmem:[#allocation8 + $0x24] ss:$16 sps:$4 sm:$0xff]   ;;  %vm1446_vm9 = vcmask 57344  }
  0x52   :  { %v169_v62 = vrot.slane %v168_v57, 1  ;;  %v177_v63 = vpack.c.bf16 %v161_v56, %v161_v56  ;;  %v242_v2 = vsel %vm241_vm5, %v231_v60, %v240_v1  ;;  %v1688_v32 = vld [vmem:[#allocation8 + $0x240] ss:$16 sps:$4 sm:$0xff]   ;;  %v1696_v34 = vld [vmem:[#allocation8 + $0x224] ss:$16 sps:$4 sm:$0xff]  }
  0x53   :  { %v244_v5 = vsel %vm243_vm6, %v232_v0, %v242_v2  ;;  %v1691_v35 = vld [vmem:[#allocation8 + $0x20] ss:$16 sps:$4 sm:$0xff]   ;;  %v1699_v37 = vld [vmem:[#allocation8 + $0x4] ss:$16 sps:$4 sm:$0xff]  }
  0x54   :  { %v170_v3 = vadd.f32 %v169_v62, %v168_v57  ;;  %v233_v4 = vunpack.c.l.b16 %v177_v63  ;;  %v1694_v36 = vld [vmem:[#allocation8 + $0x220] ss:$16 sps:$4 sm:$0xff]   ;;  %v1702_v38 = vld [vmem:[#allocation8 + $0x204] ss:$16 sps:$4 sm:$0xff]  }
  0x55   :  { %v1697_v39 = vld [vmem:[#allocation8] ss:$16 sps:$4 sm:$0xff]   ;;  %v1705_v41 = vld [vmem:[#allocation8 + $0x1e4] ss:$16 sps:$4 sm:$0xff]  }
  0x56   :  { %v178_v6 = vpack.c.bf16 %v170_v3, %v170_v3  ;;  %v246_v7 = vsel %vm245_vm7, %v233_v4, %v244_v5  ;;  %v1700_v40 = vld [vmem:[#allocation8 + $0x200] ss:$16 sps:$4 sm:$0xff]   ;;  %v1708_v42 = vld [vmem:[#allocation8 + $0x3e4] ss:$16 sps:$4 sm:$0xff]  }
  0x57   :  { %v1703_v43 = vld [vmem:[#allocation8 + $0x1e0] ss:$16 sps:$4 sm:$0xff]   ;;  %v1711_v45 = vld [vmem:[#allocation8 + $0x1c4] ss:$16 sps:$4 sm:$0xff]  }
  0x58   :  { %v234_v8 = vunpack.c.l.b16 %v178_v6  ;;  %v1706_v44 = vld [vmem:[#allocation8 + $0x3e0] ss:$16 sps:$4 sm:$0xff]   ;;  %v1714_v46 = vld [vmem:[#allocation8 + $0x3c4] ss:$16 sps:$4 sm:$0xff]  }
  0x59   :  { %v1709_v47 = vld [vmem:[#allocation8 + $0x1c0] ss:$16 sps:$4 sm:$0xff]   ;;  %v1717_v49 = vld [vmem:[#allocation8 + $0x1a4] ss:$16 sps:$4 sm:$0xff]  }
  0x5a   :  { %v248_v11 = vsel %vm247_vm8, %v234_v8, %v246_v7  ;;  %v1712_v48 = vld [vmem:[#allocation8 + $0x3c0] ss:$16 sps:$4 sm:$0xff]   ;;  %v1720_v50 = vld [vmem:[#allocation8 + $0x3a4] ss:$16 sps:$4 sm:$0xff]  }
  0x5b   :  { %v249_v13 = vpack.c.b16 %v248_v11, %v248_v11  ;;  %v1715_v51 = vld [vmem:[#allocation8 + $0x1a0] ss:$16 sps:$4 sm:$0xff]   ;;  %v1723_v53 = vld [vmem:[#allocation8 + $0x184] ss:$16 sps:$4 sm:$0xff]   ;;  %v199_v11 = vlaneseq }
  0x5c   :  { %v1718_v52 = vld [vmem:[#allocation8 + $0x3a0] ss:$16 sps:$4 sm:$0xff]   ;;  %v1726_v54 = vld [vmem:[#allocation8 + $0x384] ss:$16 sps:$4 sm:$0xff]  }
  0x5d   :  { %1486 = vmatmul.mubr.msk.bf16.vlgmr.msra.gmra.mxu0 %vm98_vm1, %v249_v13  ;;  %1488 = vmatmul.mubr.msk.bf16.vlgmr.msra.gmra.mxu1 %vm98_vm1, %v249_v13  ;;  %v1721_v55 = vld [vmem:[#allocation8 + $0x180] ss:$16 sps:$4 sm:$0xff]   ;;  %v1729_v57 = vld [vmem:[#allocation8 + $0x164] ss:$16 sps:$4 sm:$0xff]  }
  0x5e   :  { %1237 = vmatpush1.bf16.msra.mxu0 %v1655_v9  ;;  %1278 = vmatpush1.bf16.msra.mxu1 %v1658_v10  ;;  %v1724_v56 = vld [vmem:[#allocation8 + $0x380] ss:$16 sps:$4 sm:$0xff]   ;;  %v1732_v58 = vld [vmem:[#allocation8 + $0x364] ss:$16 sps:$4 sm:$0xff]   ;;  %v1753_v9 = vld [vmem:[#allocation8 + $0xec] ss:$16 sps:$4 sm:$0xff]  }
  0x5f   :  { %1238 = vmatprep.subr.bf16.mxu0 %v1663_v12  ;;  %1279 = vmatprep.subr.bf16.mxu1 %v1666_v14  ;;  %v1727_v59 = vld [vmem:[#allocation8 + $0x160] ss:$16 sps:$4 sm:$0xff]   ;;  %v1735_v61 = vld [vmem:[#allocation8 + $0x144] ss:$16 sps:$4 sm:$0xff]   ;;  %v1756_v10 = vld [vmem:[#allocation8 + $0x2ec] ss:$16 sps:$4 sm:$0xff]  }
  0x60   :  { %v1730_v60 = vld [vmem:[#allocation8 + $0x360] ss:$16 sps:$4 sm:$0xff]   ;;  %v1738_v62 = vld [vmem:[#allocation8 + $0x344] ss:$16 sps:$4 sm:$0xff]   ;;  %v2045_v12 = vshrl.u32 %v199_v11, 7 }
  0x61   :  { %v1733_v63 = vld [vmem:[#allocation8 + $0x140] ss:$16 sps:$4 sm:$0xff]   ;;  %v1741_v1 = vld [vmem:[#allocation8 + $0x124] ss:$16 sps:$4 sm:$0xff]  }
  0x62   :  { %1239 = vmatpush1.bf16.msra.mxu0 %v1661_v15  ;;  %1280 = vmatpush1.bf16.msra.mxu1 %v1664_v16  ;;  %v1736_v0 = vld [vmem:[#allocation8 + $0x340] ss:$16 sps:$4 sm:$0xff]   ;;  %v1744_v2 = vld [vmem:[#allocation8 + $0x324] ss:$16 sps:$4 sm:$0xff]   ;;  %v2048_v13 = vsub.s32 0, %v2045_v12  ;;  %v2051_v14 = vsub.s32 2, %v2045_v12 }
  0x63   :  { %1240 = vmatprep.subr.bf16.mxu0 %v1669_v17  ;;  %1281 = vmatprep.subr.bf16.mxu1 %v1672_v18  ;;  %v1739_v3 = vld [vmem:[#allocation8 + $0x120] ss:$16 sps:$4 sm:$0xff]   ;;  %v1747_v5 = vld [vmem:[#allocation8 + $0x104] ss:$16 sps:$4 sm:$0xff]   ;;  %v2057_v16 = vsub.s32 1, %v2045_v12  ;;  %v2060_v17 = vsub.s32 3, %v2045_v12 }
  0x64   :  { %v1742_v4 = vld [vmem:[#allocation8 + $0x320] ss:$16 sps:$4 sm:$0xff]   ;;  %v1750_v6 = vld [vmem:[#allocation8 + $0x304] ss:$16 sps:$4 sm:$0xff]  }
  0x65   :  { %v1745_v7 = vld [vmem:[#allocation8 + $0x100] ss:$16 sps:$4 sm:$0xff]  }
  0x66   :  { %1241 = vmatpush1.bf16.msra.mxu0 %v1667_v19  ;;  %1282 = vmatpush1.bf16.msra.mxu1 %v1670_v20  ;;  %v1748_v8 = vld [vmem:[#allocation8 + $0x300] ss:$16 sps:$4 sm:$0xff]  }
  0x67   :  { %1242 = vmatprep.subr.bf16.mxu0 %v1675_v21  ;;  %1283 = vmatprep.subr.bf16.mxu1 %v1678_v22  ;;  %v197_v15 = vld [vmem:[%s2095_s2] sm:$0xf] }
  0x68   :  { %v202_v18 = vrot.slane %v197_v15, %v2048_v13  ;;  %v210_v19 = vrot.slane %v197_v15, %v2051_v14  ;;  %v206_v20 = vrot.slane %v197_v15, %v2057_v16  ;;  %v214_v21 = vrot.slane %v197_v15, %v2060_v17  ;;  %v1802_v15 = vld [vmem:[#allocation8 + $0x3e8] ss:$16 sps:$4 sm:$0xff]  }
  0x6a   :  { %1243 = vmatpush1.bf16.msra.mxu0 %v1673_v23  ;;  %1284 = vmatpush1.bf16.msra.mxu1 %v1676_v24 }
  0x6b   :  { %1244 = vmatprep.subr.bf16.mxu0 %v1681_v25  ;;  %1285 = vmatprep.subr.bf16.mxu1 %v1684_v26 }
  0x6e   :  { %1245 = vmatpush1.bf16.msra.mxu0 %v1679_v27  ;;  %1286 = vmatpush1.bf16.msra.mxu1 %v1682_v28 }
  0x6f   :  { %1246 = vmatprep.subr.bf16.mxu0 %v1687_v29  ;;  %1287 = vmatprep.subr.bf16.mxu1 %v1690_v30 }
  0x72   :  { %1247 = vmatpush1.bf16.msra.mxu0 %v1685_v31  ;;  %1288 = vmatpush1.bf16.msra.mxu1 %v1688_v32 }
  0x73   :  { %1248 = vmatprep.subr.bf16.mxu0 %v1693_v33  ;;  %1289 = vmatprep.subr.bf16.mxu1 %v1696_v34 }
  0x76   :  { %1249 = vmatpush1.bf16.msra.mxu0 %v1691_v35  ;;  %1290 = vmatpush1.bf16.msra.mxu1 %v1694_v36 }
  0x77   :  { %1250 = vmatprep.subr.bf16.mxu0 %v1699_v37  ;;  %1291 = vmatprep.subr.bf16.mxu1 %v1702_v38 }
  0x7a   :  { %1251 = vmatpush1.bf16.msra.mxu0 %v1697_v39  ;;  %1292 = vmatpush1.bf16.msra.mxu1 %v1700_v40 }
  0x7b   :  { %1252 = vmatprep.subr.bf16.mxu0 %v1705_v41  ;;  %1293 = vmatprep.subr.bf16.mxu1 %v1708_v42  ;;  %v1751_v41 = vld [vmem:[#allocation8 + $0xe8] ss:$16 sps:$4 sm:$0xff]  }
  0x7c   :  { %v1754_v42 = vld [vmem:[#allocation8 + $0x2e8] ss:$16 sps:$4 sm:$0xff]  }
  0x7e   :  { %1253 = vmatpush2.bf16.msra.mxu0 %v1703_v43  ;;  %1294 = vmatpush2.bf16.msra.mxu1 %v1706_v44  ;;  %v1759_v44 = vld [vmem:[#allocation8 + $0xcc] ss:$16 sps:$4 sm:$0xff]  }
  0x7f   :  { %1254 = vmatprep.subr.bf16.mxu0 %v1711_v45  ;;  %1295 = vmatprep.subr.bf16.mxu1 %v1714_v46  ;;  %v1762_v45 = vld [vmem:[#allocation8 + $0x2cc] ss:$16 sps:$4 sm:$0xff]   ;;  %v1757_v46 = vld [vmem:[#allocation8 + $0xc8] ss:$16 sps:$4 sm:$0xff]  }
  0x82   :  { %1255 = vmatpush2.bf16.msra.mxu0 %v1709_v47  ;;  %1296 = vmatpush2.bf16.msra.mxu1 %v1712_v48  ;;  %v1760_v47 = vld [vmem:[#allocation8 + $0x2c8] ss:$16 sps:$4 sm:$0xff]   ;;  %v1765_v48 = vld [vmem:[#allocation8 + $0xac] ss:$16 sps:$4 sm:$0xff]  }
  0x83   :  { %1256 = vmatprep.subr.bf16.mxu0 %v1717_v49  ;;  %1297 = vmatprep.subr.bf16.mxu1 %v1720_v50  ;;  %v1768_v49 = vld [vmem:[#allocation8 + $0x2ac] ss:$16 sps:$4 sm:$0xff]   ;;  %v1763_v50 = vld [vmem:[#allocation8 + $0xa8] ss:$16 sps:$4 sm:$0xff]  }
  0x86   :  { %1257 = vmatpush2.bf16.msra.mxu0 %v1715_v51  ;;  %1298 = vmatpush2.bf16.msra.mxu1 %v1718_v52  ;;  %v1766_v51 = vld [vmem:[#allocation8 + $0x2a8] ss:$16 sps:$4 sm:$0xff]   ;;  %v1771_v52 = vld [vmem:[#allocation8 + $0x8c] ss:$16 sps:$4 sm:$0xff]  }
  0x87   :  { %1258 = vmatprep.subr.bf16.mxu0 %v1723_v53  ;;  %1299 = vmatprep.subr.bf16.mxu1 %v1726_v54  ;;  %v1774_v53 = vld [vmem:[#allocation8 + $0x28c] ss:$16 sps:$4 sm:$0xff]   ;;  %v1769_v54 = vld [vmem:[#allocation8 + $0x88] ss:$16 sps:$4 sm:$0xff]  }
  0x8a   :  { %1259 = vmatpush2.bf16.msra.mxu0 %v1721_v55  ;;  %1300 = vmatpush2.bf16.msra.mxu1 %v1724_v56  ;;  %v1772_v55 = vld [vmem:[#allocation8 + $0x288] ss:$16 sps:$4 sm:$0xff]   ;;  %v1777_v56 = vld [vmem:[#allocation8 + $0x6c] ss:$16 sps:$4 sm:$0xff]  }
  0x8b   :  { %1260 = vmatprep.subr.bf16.mxu0 %v1729_v57  ;;  %1301 = vmatprep.subr.bf16.mxu1 %v1732_v58  ;;  %v1780_v57 = vld [vmem:[#allocation8 + $0x26c] ss:$16 sps:$4 sm:$0xff]   ;;  %v1775_v58 = vld [vmem:[#allocation8 + $0x68] ss:$16 sps:$4 sm:$0xff]  }
  0x8e   :  { %1261 = vmatpush2.bf16.msra.mxu0 %v1727_v59  ;;  %1302 = vmatpush2.bf16.msra.mxu1 %v1730_v60  ;;  %v1778_v59 = vld [vmem:[#allocation8 + $0x268] ss:$16 sps:$4 sm:$0xff]   ;;  %v1783_v60 = vld [vmem:[#allocation8 + $0x4c] ss:$16 sps:$4 sm:$0xff]  }
  0x8f   :  { %1262 = vmatprep.subr.bf16.mxu0 %v1735_v61  ;;  %1303 = vmatprep.subr.bf16.mxu1 %v1738_v62  ;;  %v1786_v61 = vld [vmem:[#allocation8 + $0x24c] ss:$16 sps:$4 sm:$0xff]   ;;  %v1781_v62 = vld [vmem:[#allocation8 + $0x48] ss:$16 sps:$4 sm:$0xff]  }
  0x92   :  { %1263 = vmatpush2.bf16.msra.mxu0 %v1733_v63  ;;  %1304 = vmatpush2.bf16.msra.mxu1 %v1736_v0  ;;  %v1784_v63 = vld [vmem:[#allocation8 + $0x248] ss:$16 sps:$4 sm:$0xff]   ;;  %v1789_v0 = vld [vmem:[#allocation8 + $0x2c] ss:$16 sps:$4 sm:$0xff]  }
  0x93   :  { %1264 = vmatprep.subr.bf16.mxu0 %v1741_v1  ;;  %1305 = vmatprep.subr.bf16.mxu1 %v1744_v2  ;;  %v1792_v1 = vld [vmem:[#allocation8 + $0x22c] ss:$16 sps:$4 sm:$0xff]   ;;  %v1787_v2 = vld [vmem:[#allocation8 + $0x28] ss:$16 sps:$4 sm:$0xff]  }
  0x96   :  { %1265 = vmatpush2.bf16.msra.mxu0 %v1739_v3  ;;  %1306 = vmatpush2.bf16.msra.mxu1 %v1742_v4  ;;  %v1790_v3 = vld [vmem:[#allocation8 + $0x228] ss:$16 sps:$4 sm:$0xff]   ;;  %v1795_v4 = vld [vmem:[#allocation8 + $0xc] ss:$16 sps:$4 sm:$0xff]  }
  0x97   :  { %1266 = vmatprep.subr.bf16.mxu0 %v1747_v5  ;;  %1307 = vmatprep.subr.bf16.mxu1 %v1750_v6  ;;  %v1798_v5 = vld [vmem:[#allocation8 + $0x20c] ss:$16 sps:$4 sm:$0xff]   ;;  %v1793_v6 = vld [vmem:[#allocation8 + $0x8] ss:$16 sps:$4 sm:$0xff]  }
  0x9a   :  { %1267 = vmatpush2.bf16.msra.mxu0 %v1745_v7  ;;  %1308 = vmatpush2.bf16.msra.mxu1 %v1748_v8  ;;  %v1796_v7 = vld [vmem:[#allocation8 + $0x208] ss:$16 sps:$4 sm:$0xff]   ;;  %v1801_v8 = vld [vmem:[#allocation8 + $0x1ec] ss:$16 sps:$4 sm:$0xff]  }
  0x9b   :  { %1318 = vmatprep.subr.bf16.mxu0 %v1753_v9  ;;  %1359 = vmatprep.subr.bf16.mxu1 %v1756_v10  ;;  %v1804_v9 = vld [vmem:[#allocation8 + $0x3ec] ss:$16 sps:$4 sm:$0xff]   ;;  %v1799_v10 = vld [vmem:[#allocation8 + $0x1e8] ss:$16 sps:$4 sm:$0xff]  }
 0x11d   :  { %v390_v22 = vpop.f32.mrf.mxu0  ;;  %v431_v23 = vpop.f32.mrf.mxu1 }
 0x11e   :  { %v391_v24 = vadd.f32 %v390_v22, %v202_v18  ;;  %v432_v25 = vadd.f32 %v431_v23, %v210_v19  ;;  %v1807_v18 = vld [vmem:[#allocation8 + $0x1cc] ss:$16 sps:$4 sm:$0xff]  }
 0x11f   :  { %v392_v26 = vpop.f32.mrf.mxu0  ;;  %v433_v27 = vpop.f32.mrf.mxu1  ;;  %v1810_v19 = vld [vmem:[#allocation8 + $0x3cc] ss:$16 sps:$4 sm:$0xff]  }
 0x120   :  { %v440_v28 = vmax.f32 %v432_v25, 0.0  ;;  %v393_v29 = vadd.f32 %v392_v26, %v206_v20  ;;  %v434_v30 = vadd.f32 %v433_v27, %v214_v21  ;;  %v438_v31 = vmax.f32 %v391_v24, 0.0  ;;  %v1805_v20 = vld [vmem:[#allocation8 + $0x1c8] ss:$16 sps:$4 sm:$0xff]   ;;  %v1813_v22 = vld [vmem:[#allocation8 + $0x1ac] ss:$16 sps:$4 sm:$0xff]  }
 0x121   :  { %v394_v32 = vpop.f32.mrf.mxu0  ;;  %v435_v33 = vpop.f32.mrf.mxu1  ;;  %v1808_v21 = vld [vmem:[#allocation8 + $0x3c8] ss:$16 sps:$4 sm:$0xff]   ;;  %v1816_v23 = vld [vmem:[#allocation8 + $0x3ac] ss:$16 sps:$4 sm:$0xff]  }
 0x122   :  { %v439_v34 = vmax.f32 %v393_v29, 0.0  ;;  %v441_v35 = vmax.f32 %v434_v30, 0.0  ;;  %v2066_v36 = vpack.c.bf16 %v440_v28, %v440_v28  ;;  %v2068_v43 = vpack.c.bf16 %v438_v31, %v438_v31  ;;  %v1811_v24 = vld [vmem:[#allocation8 + $0x1a8] ss:$16 sps:$4 sm:$0xff]   ;;  %v1819_v26 = vld [vmem:[#allocation8 + $0x18c] ss:$16 sps:$4 sm:$0xff]  }
 0x123   :  { %v395_v37 = vpop.f32.mrf.mxu0  ;;  %v436_v38 = vpop.f32.mrf.mxu1  ;;  %v1814_v25 = vld [vmem:[#allocation8 + $0x3a8] ss:$16 sps:$4 sm:$0xff]   ;;  %v1822_v27 = vld [vmem:[#allocation8 + $0x38c] ss:$16 sps:$4 sm:$0xff]  }
 0x124   :  { %v443_v39 = vpack.c.bf16 %v439_v34, %v439_v34  ;;  %v445_v40 = vpack.c.bf16 %v441_v35, %v441_v35  ;;  %v1817_v28 = vld [vmem:[#allocation8 + $0x188] ss:$16 sps:$4 sm:$0xff]   ;;  %v1825_v30 = vld [vmem:[#allocation8 + $0x16c] ss:$16 sps:$4 sm:$0xff]  }
 0x125   :  { %v1820_v29 = vld [vmem:[#allocation8 + $0x388] ss:$16 sps:$4 sm:$0xff]   ;;  %v1828_v31 = vld [vmem:[#allocation8 + $0x36c] ss:$16 sps:$4 sm:$0xff]  }
 0x126   :  { %1268 = vmatprep.mubr.bf16.mxu0 %v443_v39  ;;  %1309 = vmatprep.mubr.bf16.mxu1 %v445_v40  ;;  %v1823_v32 = vld [vmem:[#allocation8 + $0x168] ss:$16 sps:$4 sm:$0xff]   ;;  %v1831_v34 = vld [vmem:[#allocation8 + $0x14c] ss:$16 sps:$4 sm:$0xff]  }
 0x127   :  { %1269 = vmatmul.mubr.bf16.vlgmr.msra.gmra.mxu0 %v2068_v43  ;;  %1310 = vmatmul.mubr.bf16.vlgmr.msra.gmra.mxu1 %v2066_v36  ;;  %v1826_v33 = vld [vmem:[#allocation8 + $0x368] ss:$16 sps:$4 sm:$0xff]   ;;  %v1834_v35 = vld [vmem:[#allocation8 + $0x34c] ss:$16 sps:$4 sm:$0xff]  }
 0x128   :  { %1319 = vmatpush1.bf16.msra.mxu0 %v1751_v41  ;;  %1360 = vmatpush1.bf16.msra.mxu1 %v1754_v42  ;;  %v1829_v37 = vld [vmem:[#allocation8 + $0x148] ss:$16 sps:$4 sm:$0xff]  }
 0x129   :  { %1350 = vmatprep.mubr.bf16.mxu0 %v443_v39  ;;  %1391 = vmatprep.mubr.bf16.mxu1 %v445_v40  ;;  %v1832_v38 = vld [vmem:[#allocation8 + $0x348] ss:$16 sps:$4 sm:$0xff]   ;;  %v1837_v39 = vld [vmem:[#allocation8 + $0x12c] ss:$16 sps:$4 sm:$0xff]  }
 0x12a   :  { %1320 = vmatprep.subr.bf16.mxu0 %v1759_v44  ;;  %1361 = vmatprep.subr.bf16.mxu1 %v1762_v45  ;;  %v1840_v40 = vld [vmem:[#allocation8 + $0x32c] ss:$16 sps:$4 sm:$0xff]   ;;  %v1835_v41 = vld [vmem:[#allocation8 + $0x128] ss:$16 sps:$4 sm:$0xff]  }
 0x12b   :  { %v1838_v42 = vld [vmem:[#allocation8 + $0x328] ss:$16 sps:$4 sm:$0xff]   ;;  %v1843_v44 = vld [vmem:[#allocation8 + $0x10c] ss:$16 sps:$4 sm:$0xff]  }
 0x12c   :  { %1321 = vmatpush1.bf16.msra.mxu0 %v1757_v46  ;;  %1362 = vmatpush1.bf16.msra.mxu1 %v1760_v47  ;;  %v1846_v45 = vld [vmem:[#allocation8 + $0x30c] ss:$16 sps:$4 sm:$0xff]   ;;  %v1841_v46 = vld [vmem:[#allocation8 + $0x108] ss:$16 sps:$4 sm:$0xff]  }
 0x12d   :  { %1322 = vmatprep.subr.bf16.mxu0 %v1765_v48  ;;  %1363 = vmatprep.subr.bf16.mxu1 %v1768_v49  ;;  %v1844_v47 = vld [vmem:[#allocation8 + $0x308] ss:$16 sps:$4 sm:$0xff]  }
 0x130   :  { %1323 = vmatpush1.bf16.msra.mxu0 %v1763_v50  ;;  %1364 = vmatpush1.bf16.msra.mxu1 %v1766_v51 }
 0x131   :  { %1324 = vmatprep.subr.bf16.mxu0 %v1771_v52  ;;  %1365 = vmatprep.subr.bf16.mxu1 %v1774_v53 }
 0x134   :  { %1325 = vmatpush1.bf16.msra.mxu0 %v1769_v54  ;;  %1366 = vmatpush1.bf16.msra.mxu1 %v1772_v55 }
 0x135   :  { %1326 = vmatprep.subr.bf16.mxu0 %v1777_v56  ;;  %1367 = vmatprep.subr.bf16.mxu1 %v1780_v57  ;;  %v574_v56 = vld [vmem:[%s2097_s4] sm:$0xf] }
 0x136   :  { %v583_v57 = vrot.slane %v574_v56, %v2057_v16 }
 0x138   :  { %1327 = vmatpush1.bf16.msra.mxu0 %v1775_v58  ;;  %1368 = vmatpush1.bf16.msra.mxu1 %v1778_v59  ;;  %v579_v58 = vrot.slane %v574_v56, %v2048_v13 }
 0x139   :  { %1328 = vmatprep.subr.bf16.mxu0 %v1783_v60  ;;  %1369 = vmatprep.subr.bf16.mxu1 %v1786_v61  ;;  %v587_v61 = vrot.slane %v574_v56, %v2051_v14 }
 0x13c   :  { %1329 = vmatpush1.bf16.msra.mxu0 %v1781_v62  ;;  %1370 = vmatpush1.bf16.msra.mxu1 %v1784_v63  ;;  %v1404_v62 = vld [vmem:[#allocation9] sm:$0xf] }
 0x13d   :  { %1330 = vmatprep.subr.bf16.mxu0 %v1789_v0  ;;  %1371 = vmatprep.subr.bf16.mxu1 %v1792_v1  ;;  %v1413_v0 = vrot.slane %v1404_v62, %v2057_v16  ;;  %v591_v1 = vrot.slane %v574_v56, %v2060_v17 }
 0x140   :  { %1331 = vmatpush1.bf16.msra.mxu0 %v1787_v2  ;;  %1372 = vmatpush1.bf16.msra.mxu1 %v1790_v3 }
 0x141   :  { %1332 = vmatprep.subr.bf16.mxu0 %v1795_v4  ;;  %1373 = vmatprep.subr.bf16.mxu1 %v1798_v5  ;;  %v1409_v5 = vrot.slane %v1404_v62, %v2048_v13 }
 0x144   :  { %1333 = vmatpush1.bf16.msra.mxu0 %v1793_v6  ;;  %1374 = vmatpush1.bf16.msra.mxu1 %v1796_v7 }
 0x145   :  { %1334 = vmatprep.subr.bf16.mxu0 %v1801_v8  ;;  %1375 = vmatprep.subr.bf16.mxu1 %v1804_v9 }
 0x148   :  { %1335 = vmatpush2.bf16.msra.mxu0 %v1799_v10  ;;  %1376 = vmatpush2.bf16.msra.mxu1 %v1802_v15  ;;  %v1417_v15 = vrot.slane %v1404_v62, %v2051_v14  ;;  %v1436_v14 = vstv %s2099_s6 }
 0x149   :  { %1336 = vmatprep.subr.bf16.mxu0 %v1807_v18  ;;  %1377 = vmatprep.subr.bf16.mxu1 %v1810_v19 }
 0x14c   :  { %1337 = vmatpush2.bf16.msra.mxu0 %v1805_v20  ;;  %1378 = vmatpush2.bf16.msra.mxu1 %v1808_v21 }
 0x14d   :  { %1338 = vmatprep.subr.bf16.mxu0 %v1813_v22  ;;  %1379 = vmatprep.subr.bf16.mxu1 %v1816_v23  ;;  %v1421_v23 = vrot.slane %v1404_v62, %v2060_v17 }
 0x150   :  { %1339 = vmatpush2.bf16.msra.mxu0 %v1811_v24  ;;  %1380 = vmatpush2.bf16.msra.mxu1 %v1814_v25 }
 0x151   :  { %1340 = vmatprep.subr.bf16.mxu0 %v1819_v26  ;;  %1381 = vmatprep.subr.bf16.mxu1 %v1822_v27 }
 0x154   :  { %1341 = vmatpush2.bf16.msra.mxu0 %v1817_v28  ;;  %1382 = vmatpush2.bf16.msra.mxu1 %v1820_v29 }
 0x155   :  { %1342 = vmatprep.subr.bf16.mxu0 %v1825_v30  ;;  %1383 = vmatprep.subr.bf16.mxu1 %v1828_v31  ;;  %v1440_v31 = vand.u32 127, %v199_v11 }
 0x158   :  { %1343 = vmatpush2.bf16.msra.mxu0 %v1823_v32  ;;  %1384 = vmatpush2.bf16.msra.mxu1 %v1826_v33  ;;  %v1443_v32 = vsub.s32 %v1440_v31, %v2045_v12 }
 0x159   :  { %1344 = vmatprep.subr.bf16.mxu0 %v1831_v34  ;;  %1385 = vmatprep.subr.bf16.mxu1 %v1834_v35 }
 0x15c   :  { %1345 = vmatpush2.bf16.msra.mxu0 %v1829_v37  ;;  %1386 = vmatpush2.bf16.msra.mxu1 %v1832_v38 }
 0x15d   :  { %1346 = vmatprep.subr.bf16.mxu0 %v1837_v39  ;;  %1387 = vmatprep.subr.bf16.mxu1 %v1840_v40 }
 0x160   :  { %1347 = vmatpush2.bf16.msra.mxu0 %v1835_v41  ;;  %1388 = vmatpush2.bf16.msra.mxu1 %v1838_v42 }
 0x161   :  { %1348 = vmatprep.subr.bf16.mxu0 %v1843_v44  ;;  %1389 = vmatprep.subr.bf16.mxu1 %v1846_v45 }
 0x164   :  { %1349 = vmatpush2.bf16.msra.mxu0 %v1841_v46  ;;  %1390 = vmatpush2.bf16.msra.mxu1 %v1844_v47 }
 0x167   :  { %1351 = vmatmul.mubr.bf16.vlgmr.msra.gmra.mxu0 %v2068_v43  ;;  %1392 = vmatmul.mubr.bf16.vlgmr.msra.gmra.mxu1 %v2066_v36 }
 0x1e7   :  { %v1270_v48 = vpop.f32.mrf.mxu0  ;;  %v1311_v49 = vpop.f32.mrf.mxu1 }
 0x1e8   :  { %v1271_v43 = vadd.f32 %v1270_v48, %v579_v58 }
 0x1e9   :  { %v1272_v50 = vpop.f32.mrf.mxu0  ;;  %v1313_v51 = vpop.f32.mrf.mxu1 }
 0x1ea   :  { %v1273_v59 = vadd.f32 %v1272_v50, %v583_v57  ;;  %v1312_v36 = vadd.f32 %v1311_v49, %v1271_v43 }
 0x1eb   :  { %v1274_v52 = vpop.f32.mrf.mxu0  ;;  %v1315_v53 = vpop.f32.mrf.mxu1 }
 0x1ec   :  { %v1314_v60 = vadd.f32 %v1313_v51, %v1273_v59  ;;  %v1400_v4 = vmax.f32 %v1312_v36, 0.0 }
 0x1ed   :  { %v1275_v54 = vpop.f32.mrf.mxu0  ;;  %v1316_v55 = vpop.f32.mrf.mxu1 }
 0x1ee   :  { %v1401_v63 = vmax.f32 %v1314_v60, 0.0  ;;  %v1426_v21 = vmul.f32 %v1409_v5, %v1400_v4 }
 0x1f0   :  { %v1427_v9 = vmul.f32 %v1413_v0, %v1401_v63 }
 0x1f2   :  { %v1430_v13 = vadd.f32 %v1427_v9, %v1426_v21 }
 0x227   :  { %v1352_v2 = vpop.f32.mrf.mxu0  ;;  %v1393_v3 = vpop.f32.mrf.mxu1 }
 0x228   :  { %v1353_v6 = vadd.f32 %v1352_v2, %v587_v61 }
 0x229   :  { %v1354_v7 = vpop.f32.mrf.mxu0  ;;  %v1395_v8 = vpop.f32.mrf.mxu1 }
 0x22a   :  { %v1394_v10 = vadd.f32 %v1393_v3, %v1353_v6  ;;  %v1355_v18 = vadd.f32 %v1354_v7, %v591_v1 }
 0x22b   :  { %v1356_v19 = vpop.f32.mrf.mxu0  ;;  %v1397_v20 = vpop.f32.mrf.mxu1 }
 0x22c   :  { %v1402_v22 = vmax.f32 %v1394_v10, 0.0  ;;  %v1396_v16 = vadd.f32 %v1395_v8, %v1355_v18 }
 0x22d   :  { %v1357_v24 = vpop.f32.mrf.mxu0  ;;  %v1398_v25 = vpop.f32.mrf.mxu1 }
 0x22e   :  { %v1428_v26 = vmul.f32 %v1417_v15, %v1402_v22  ;;  %v1403_v27 = vmax.f32 %v1396_v16, 0.0 }
 0x230   :  { %v1429_v28 = vmul.f32 %v1421_v23, %v1403_v27  ;;  %v1431_v29 = vadd.f32 %v1430_v13, %v1428_v26 }
 0x232   :  { %v1432_v30 = vadd.f32 %v1431_v29, %v1429_v28 }
 0x234   :  { %1433 = vadd.xlane.f32.xlu0 %v1432_v30 }
 0x2bd   :  { %v1434_v33 = vpop.xlane.xlu0 %1433 }
 0x2be   :  { %v1437_v17 = vadd.f32 %v1436_v14, %v1434_v33 }
 0x2c0   :  { %v1444_v34 = vrot.slane %v1437_v17, %v1443_v32 }
 0x2c2   :  { %1447 = vst.msk [vmem:[#allocation11] sm:$0x1] %vm1446_vm9, %v1444_v34 }
 0x2c3   :  { %1938 = shalt.err (!%p1935_p10)
}
 0x2c4   :  { %1457 = dma.vmem_to_hbm [thread:$0]  %s1455_s26, 16, %s2100_s7, [#allocation5]  }
 0x2c5   :  { %1953 = dma.done.wait [#allocation5], 16  }
 0x2c6   :  { %1954 = vsyncadd [#allocation5], 4294967280 }
 0x2c7   :  { %1461 = vsyncpa [#allocation4], 1 }
 0x2c8   :  { %1462 = vsyncpa [#allocation7], 1 }
 0x2c9   :  { %1463 = vsyncpa [#allocation10], 1 }
 0x2ca   :  { %1464 = vsyncpa [#allocation5], 1 }

</bundles_post_ra>
